<compile_context>
chip_gen: v5e
topology: v5e:2x2
jax: 0.10.0
libtpu: 0.0.40
codegen_flags: <defaults>
</compile_context>

<pallas_src>
import jax
import jax.numpy as jnp
from jax import lax
from jax.experimental import pallas as pl
from jax.experimental.pallas import tpu as pltpu


# --------------------------------------------------------------------------
# Pallas kernel: one DepthAttentionBlock forward for one level, whole batch.
#   spatial_pool  : 1x1 conv (C->1) -> softmax over HW -> weighted channel sum
#   channel_mul   : 1x1 conv (C->P) -> LayerNorm(P) -> ReLU -> 1x1 conv (P->C)
#   fusion        : sigmoid(x * sigmoid(depth * sigmoid(channel_mul)))
# Blocks: x/d/o (1,B,C,HW), wm (1,C,1), w1/w2 (1,C,P), gamma/beta (1,1,P).
# --------------------------------------------------------------------------
def _attention_fusion_kernel(x_ref, d_ref, wm_ref, w1_ref, g_ref, bt_ref,
                             w2_ref, o_ref):
    x = x_ref[0].astype(jnp.float32)            # (B, C, HW)
    d = d_ref[0].astype(jnp.float32)            # (B, C, HW)
    wm = wm_ref[0]                               # (C, 1)

    # ---- spatial_pool: conv_mask (C->1) as VPU mul + sublane reduce ----
    logits = jnp.sum(d * wm[None, :, :], axis=1)             # (B, HW)
    m = jnp.max(logits, axis=-1, keepdims=True)              # (B, 1)
    e = jnp.exp(logits - m)                                   # (B, HW)
    s = jnp.sum(e, axis=-1, keepdims=True)                    # (B, 1)

    # context = (sum_hw d * e) / s  -- exact divide confined to (B, C, 1)
    num = jnp.sum(d * e[:, None, :], axis=-1, keepdims=True)  # (B, C, 1)
    context = num * (1.0 / s)[:, None, :]                     # (B, C, 1)

    # ---- channel_mul_conv: 1x1 (C->P) -> LayerNorm(P) -> ReLU -> 1x1 (P->C)
    h = jnp.sum(w1_ref[0][None, :, :] * context, axis=1)      # (B, P)
    mu = jnp.mean(h, axis=-1, keepdims=True)
    var = jnp.mean((h - mu) ** 2, axis=-1, keepdims=True)
    hn = (h - mu) * lax.rsqrt(var + 1e-5)
    hn = hn * g_ref[0] + bt_ref[0]                             # (1, P) affine
    hn = jnp.maximum(hn, 0.0)
    cm = jnp.sum(w2_ref[0][None, :, :] * hn[:, None, :],
                 axis=-1, keepdims=True)                       # (B, C, 1)
    cm = jax.nn.sigmoid(cm)

    # ---- final fusion (broadcast (B,C,1) over HW) ----
    out1 = jax.nn.sigmoid(d * cm)
    o_ref[0] = jax.nn.sigmoid(x * out1).astype(o_ref.dtype)


# --------------------------------------------------------------------------
# Wrapper: levels grouped by exact HW; one pallas_call per group, batch folded
# into the block.  No padding, no softmax mask, no padded-stack round trips.
# --------------------------------------------------------------------------
def feature_fusion_forward(img_feat_list, depth_feat_list, params_list):
    """Equivalent of feature_fusion.forward with fusion_method='attention'."""
    assert len(img_feat_list) == len(depth_feat_list), \
        "Input channel of image feature and depth feature must the same!"
    L = len(img_feat_list)
    B, C, _, _ = img_feat_list[0].shape
    P = params_list[0]["w1"].shape[1]
    dtype = img_feat_list[0].dtype

    # group level indices by their exact flattened spatial size
    groups = {}
    for i, f in enumerate(img_feat_list):
        hw = f.shape[2] * f.shape[3]
        groups.setdefault(hw, []).append(i)

    outs = [None] * L
    for hw, idxs in groups.items():
        Lg = len(idxs)
        # (B,C,H,W) -> (B,C,HW) is a free reshape; stacking only happens for
        # levels that share the same HW (a stack of 1 is just a reshape).
        x = jnp.stack([img_feat_list[i].reshape(B, C, hw) for i in idxs])
        d = jnp.stack([depth_feat_list[i].reshape(B, C, hw) for i in idxs])
        wm = jnp.stack([params_list[i]["w_mask"] for i in idxs])   # (Lg,C,1)
        w1 = jnp.stack([params_list[i]["w1"] for i in idxs])       # (Lg,C,P)
        g = jnp.stack([params_list[i]["gamma"] for i in idxs])     # (Lg,1,P)
        bt = jnp.stack([params_list[i]["beta"] for i in idxs])     # (Lg,1,P)
        w2 = jnp.stack([params_list[i]["w2"] for i in idxs])       # (Lg,C,P)

        out = pl.pallas_call(
            _attention_fusion_kernel,
            out_shape=jax.ShapeDtypeStruct((Lg, B, C, hw), dtype),
            grid=(Lg,),
            in_specs=[
                pl.BlockSpec((1, B, C, hw), lambda l: (l, 0, 0, 0)),  # x
                pl.BlockSpec((1, B, C, hw), lambda l: (l, 0, 0, 0)),  # depth
                pl.BlockSpec((1, C, 1), lambda l: (l, 0, 0)),         # conv_mask w
                pl.BlockSpec((1, C, P), lambda l: (l, 0, 0)),         # channel_mul conv1
                pl.BlockSpec((1, 1, P), lambda l: (l, 0, 0)),         # LayerNorm gamma
                pl.BlockSpec((1, 1, P), lambda l: (l, 0, 0)),         # LayerNorm beta
                pl.BlockSpec((1, C, P), lambda l: (l, 0, 0)),         # channel_mul conv2
            ],
            out_specs=pl.BlockSpec((1, B, C, hw), lambda l: (l, 0, 0, 0)),
            compiler_params=pltpu.CompilerParams(
                dimension_semantics=("parallel",)),
        )(x, d, wm, w1, g, bt, w2)

        for j, i in enumerate(idxs):
            outs[i] = out[j].reshape(img_feat_list[i].shape)
    return outs


# --------------------------------------------------------------------------
# Deterministic parameter init (shapes from DepthAttentionBlock.__init__)
# --------------------------------------------------------------------------
def init_attention_params(key, channel, hidden):
    k1, k2, k3 = jax.random.split(key, 3)
    return {
        # conv_mask: Conv2d(C, 1, 1x1, bias=False)  weight (1,C,1,1) -> (C, 1)
        "w_mask": 0.1 * jax.random.normal(k1, (channel, 1), jnp.float32),
        # channel_mul_conv[0]: Conv2d(C, P, 1x1) weight (P,C,1,1) -> stored (C, P)
        "w1": 0.1 * jax.random.normal(k2, (channel, hidden), jnp.float32),
        # LayerNorm([P, 1, 1]) affine params
        "gamma": jnp.ones((1, hidden), jnp.float32),
        "beta": jnp.zeros((1, hidden), jnp.float32),
        # channel_mul_conv[3]: Conv2d(P, C, 1x1) weight (C,P,1,1) -> stored (C, P)
        "w2": 0.1 * jax.random.normal(k3, (channel, hidden), jnp.float32),
    }


# --------------------------------------------------------------------------
# Pure-JAX reference (mirrors the PyTorch math) for a correctness check
# --------------------------------------------------------------------------
def reference_block(x, d, p):
    B, C, H, W = x.shape
    HW = H * W
    dv = d.reshape(B, C, HW)
    logits = jnp.einsum("bcs,c->bs", dv, p["w_mask"][:, 0])
    attn = jax.nn.softmax(logits, axis=1)
    context = jnp.einsum("bcs,bs->bc", dv, attn)                    # (B, C)
    h = context @ p["w1"]                                           # (B, P)
    mu = jnp.mean(h, axis=1, keepdims=True)
    var = jnp.mean((h - mu) ** 2, axis=1, keepdims=True)
    hn = (h - mu) / jnp.sqrt(var + 1e-5) * p["gamma"] + p["beta"]
    hn = jnp.maximum(hn, 0.0)
    cm = jax.nn.sigmoid(jnp.einsum("bp,cp->bc", hn, p["w2"]))       # (B, C)
    cm = cm[:, :, None, None]
    out1 = jax.nn.sigmoid(d * cm)
    return jax.nn.sigmoid(x * out1)


if __name__ == "__main__":
    B = 2
    channel = 16                      # option['neck_channel']
    hidden = channel // 4 * 3         # 12
    spatial = [(16, 16), (8, 8), (8, 8), (4, 4), (4, 4)]

    key = jax.random.PRNGKey(0)
    kp, kx, kd = jax.random.split(key, 3)

    params_list = [
        init_attention_params(jax.random.fold_in(kp, i), channel, hidden)
        for i in range(5)
    ]
    img_feat_list = [
        jax.random.normal(jax.random.fold_in(kx, i), (B, channel, h, w),
                          jnp.float32)
        for i, (h, w) in enumerate(spatial)
    ]
    depth_feat_list = [
        jax.random.normal(jax.random.fold_in(kd, i), (B, channel, h, w),
                          jnp.float32)
        for i, (h, w) in enumerate(spatial)
    ]

    outs = feature_fusion_forward(img_feat_list, depth_feat_list, params_list)
    outs = [jax.block_until_ready(o) for o in outs]

    # correctness check vs pure-JAX reference
    for o, x, d, p in zip(outs, img_feat_list, depth_feat_list, params_list):
        ref = reference_block(x, d, p)
        assert o.shape == x.shape and o.dtype == x.dtype
        assert jnp.allclose(o, ref, atol=1e-4, rtol=1e-4), \
            f"max abs err {jnp.max(jnp.abs(o - ref))}"

    print("KERNEL_OK")
</pallas_src>

<mosaic_0001>
module attributes {stable_mosaic.version = 11 : i64} {
  func.func @_attention_fusion_kernel(%arg0: i32, %arg1: memref<1x2x16x256xf32, #tpu.memory_space<vmem>>, %arg2: memref<1x2x16x256xf32, #tpu.memory_space<vmem>>, %arg3: memref<1x16x1xf32, #tpu.memory_space<vmem>>, %arg4: memref<1x16x12xf32, #tpu.memory_space<vmem>>, %arg5: memref<1x1x12xf32, #tpu.memory_space<vmem>>, %arg6: memref<1x1x12xf32, #tpu.memory_space<vmem>>, %arg7: memref<1x16x12xf32, #tpu.memory_space<vmem>>, %arg8: memref<1x2x16x256xf32, #tpu.memory_space<vmem>>) attributes {dimension_semantics = [#tpu.dimension_semantics<parallel>], iteration_bounds = array<i64: 1>, scalar_prefetch = 0 : i64, scratch_operands = 0 : i64, tpu.core_type = #tpu.core_type<tc>, window_params = [{transform_indices = @transform_0, window_bounds = array<i64: 1, 2, 16, 256>}, {transform_indices = @transform_1, window_bounds = array<i64: 1, 2, 16, 256>}, {transform_indices = @transform_2, window_bounds = array<i64: 1, 16, 1>}, {transform_indices = @transform_3, window_bounds = array<i64: 1, 16, 12>}, {transform_indices = @transform_4, window_bounds = array<i64: 1, 1, 12>}, {transform_indices = @transform_5, window_bounds = array<i64: 1, 1, 12>}, {transform_indices = @transform_6, window_bounds = array<i64: 1, 16, 12>}, {transform_indices = @transform_7, window_bounds = array<i64: 1, 2, 16, 256>}]} {
    %c0 = arith.constant 0 : index
    %c0_0 = arith.constant 0 : index
    %c0_1 = arith.constant 0 : index
    %c0_2 = arith.constant 0 : index
    %0 = vector.load %arg1[%c0, %c0_0, %c0_1, %c0_2] : memref<1x2x16x256xf32, #tpu.memory_space<vmem>>, vector<1x2x16x256xf32>
    %1 = vector.shape_cast %0 : vector<1x2x16x256xf32> to vector<2x16x256xf32>
    %c0_3 = arith.constant 0 : index
    %c0_4 = arith.constant 0 : index
    %c0_5 = arith.constant 0 : index
    %c0_6 = arith.constant 0 : index
    %2 = vector.load %arg2[%c0_3, %c0_4, %c0_5, %c0_6] : memref<1x2x16x256xf32, #tpu.memory_space<vmem>>, vector<1x2x16x256xf32>
    %3 = vector.shape_cast %2 : vector<1x2x16x256xf32> to vector<2x16x256xf32>
    %c0_7 = arith.constant 0 : index
    %c0_8 = arith.constant 0 : index
    %c0_9 = arith.constant 0 : index
    %4 = vector.load %arg3[%c0_7, %c0_8, %c0_9] : memref<1x16x1xf32, #tpu.memory_space<vmem>>, vector<1x16x1xf32>
    %5 = vector.shape_cast %4 : vector<1x16x1xf32> to vector<16x1xf32>
    %6 = vector.shape_cast %5 : vector<16x1xf32> to vector<1x16x1xf32>
    %7 = vector.broadcast %6 : vector<1x16x1xf32> to vector<2x16x256xf32>
    %8 = arith.mulf %3, %7 : vector<2x16x256xf32>
    %cst = arith.constant dense<0.000000e+00> : vector<2x256xf32>
    %9 = vector.multi_reduction <add>, %8, %cst [1] : vector<2x16x256xf32> to vector<2x256xf32>
    %cst_10 = arith.constant dense<0xFF800000> : vector<2xf32>
    %10 = vector.multi_reduction <maximumf>, %9, %cst_10 [1] : vector<2x256xf32> to vector<2xf32>
    %11 = vector.shape_cast %10 : vector<2xf32> to vector<2x1xf32>
    %12 = vector.broadcast %11 : vector<2x1xf32> to vector<2x256xf32>
    %13 = arith.subf %9, %12 : vector<2x256xf32>
    %14 = math.exp %13 : vector<2x256xf32>
    %cst_11 = arith.constant dense<0.000000e+00> : vector<2xf32>
    %15 = vector.multi_reduction <add>, %14, %cst_11 [1] : vector<2x256xf32> to vector<2xf32>
    %16 = vector.shape_cast %15 : vector<2xf32> to vector<2x1xf32>
    %17 = vector.shape_cast %14 : vector<2x256xf32> to vector<2x1x256xf32>
    %18 = vector.broadcast %17 : vector<2x1x256xf32> to vector<2x16x256xf32>
    %19 = arith.mulf %3, %18 : vector<2x16x256xf32>
    %cst_12 = arith.constant dense<0.000000e+00> : vector<2x16xf32>
    %20 = vector.multi_reduction <add>, %19, %cst_12 [2] : vector<2x16x256xf32> to vector<2x16xf32>
    %21 = vector.shape_cast %20 : vector<2x16xf32> to vector<2x16x1xf32>
    %cst_13 = arith.constant 1.000000e+00 : f32
    %22 = vector.broadcast %cst_13 : f32 to vector<2x1xf32>
    %23 = arith.divf %22, %16 : vector<2x1xf32>
    %24 = vector.shape_cast %23 : vector<2x1xf32> to vector<2x1x1xf32>
    %25 = vector.broadcast %24 : vector<2x1x1xf32> to vector<2x16x1xf32>
    %26 = arith.mulf %21, %25 : vector<2x16x1xf32>
    %c0_14 = arith.constant 0 : index
    %c0_15 = arith.constant 0 : index
    %c0_16 = arith.constant 0 : index
    %27 = vector.load %arg4[%c0_14, %c0_15, %c0_16] : memref<1x16x12xf32, #tpu.memory_space<vmem>>, vector<1x16x12xf32>
    %28 = vector.shape_cast %27 : vector<1x16x12xf32> to vector<16x12xf32>
    %29 = vector.shape_cast %28 : vector<16x12xf32> to vector<1x16x12xf32>
    %30 = vector.broadcast %29 : vector<1x16x12xf32> to vector<2x16x12xf32>
    %31 = vector.broadcast %26 : vector<2x16x1xf32> to vector<2x16x12xf32>
    %32 = arith.mulf %30, %31 : vector<2x16x12xf32>
    %cst_17 = arith.constant dense<0.000000e+00> : vector<2x12xf32>
    %33 = vector.multi_reduction <add>, %32, %cst_17 [1] : vector<2x16x12xf32> to vector<2x12xf32>
    %cst_18 = arith.constant dense<0.000000e+00> : vector<2xf32>
    %34 = vector.multi_reduction <add>, %33, %cst_18 [1] : vector<2x12xf32> to vector<2xf32>
    %35 = vector.shape_cast %34 : vector<2xf32> to vector<2x1xf32>
    %cst_19 = arith.constant 1.200000e+01 : f32
    %36 = vector.broadcast %cst_19 : f32 to vector<2x1xf32>
    %37 = arith.divf %35, %36 : vector<2x1xf32>
    %38 = vector.broadcast %37 : vector<2x1xf32> to vector<2x12xf32>
    %39 = arith.subf %33, %38 : vector<2x12xf32>
    %40 = arith.mulf %39, %39 : vector<2x12xf32>
    %cst_20 = arith.constant dense<0.000000e+00> : vector<2xf32>
    %41 = vector.multi_reduction <add>, %40, %cst_20 [1] : vector<2x12xf32> to vector<2xf32>
    %42 = vector.shape_cast %41 : vector<2xf32> to vector<2x1xf32>
    %cst_21 = arith.constant 1.200000e+01 : f32
    %43 = vector.broadcast %cst_21 : f32 to vector<2x1xf32>
    %44 = arith.divf %42, %43 : vector<2x1xf32>
    %45 = vector.broadcast %37 : vector<2x1xf32> to vector<2x12xf32>
    %46 = arith.subf %33, %45 : vector<2x12xf32>
    %cst_22 = arith.constant 9.99999974E-6 : f32
    %47 = vector.broadcast %cst_22 : f32 to vector<2x1xf32>
    %48 = arith.addf %44, %47 : vector<2x1xf32>
    %49 = math.rsqrt %48 : vector<2x1xf32>
    %50 = vector.broadcast %49 : vector<2x1xf32> to vector<2x12xf32>
    %51 = arith.mulf %46, %50 : vector<2x12xf32>
    %c0_23 = arith.constant 0 : index
    %c0_24 = arith.constant 0 : index
    %c0_25 = arith.constant 0 : index
    %52 = vector.load %arg5[%c0_23, %c0_24, %c0_25] : memref<1x1x12xf32, #tpu.memory_space<vmem>>, vector<1x1x12xf32>
    %53 = vector.shape_cast %52 : vector<1x1x12xf32> to vector<1x12xf32>
    %54 = vector.broadcast %53 : vector<1x12xf32> to vector<2x12xf32>
    %55 = arith.mulf %51, %54 : vector<2x12xf32>
    %c0_26 = arith.constant 0 : index
    %c0_27 = arith.constant 0 : index
    %c0_28 = arith.constant 0 : index
    %56 = vector.load %arg6[%c0_26, %c0_27, %c0_28] : memref<1x1x12xf32, #tpu.memory_space<vmem>>, vector<1x1x12xf32>
    %57 = vector.shape_cast %56 : vector<1x1x12xf32> to vector<1x12xf32>
    %58 = vector.broadcast %57 : vector<1x12xf32> to vector<2x12xf32>
    %59 = arith.addf %55, %58 : vector<2x12xf32>
    %cst_29 = arith.constant 0.000000e+00 : f32
    %60 = vector.broadcast %cst_29 : f32 to vector<2x12xf32>
    %61 = arith.maximumf %59, %60 : vector<2x12xf32>
    %c0_30 = arith.constant 0 : index
    %c0_31 = arith.constant 0 : index
    %c0_32 = arith.constant 0 : index
    %62 = vector.load %arg7[%c0_30, %c0_31, %c0_32] : memref<1x16x12xf32, #tpu.memory_space<vmem>>, vector<1x16x12xf32>
    %63 = vector.shape_cast %62 : vector<1x16x12xf32> to vector<16x12xf32>
    %64 = vector.shape_cast %63 : vector<16x12xf32> to vector<1x16x12xf32>
    %65 = vector.shape_cast %61 : vector<2x12xf32> to vector<2x1x12xf32>
    %66 = vector.broadcast %64 : vector<1x16x12xf32> to vector<2x16x12xf32>
    %67 = vector.broadcast %65 : vector<2x1x12xf32> to vector<2x16x12xf32>
    %68 = arith.mulf %66, %67 : vector<2x16x12xf32>
    %cst_33 = arith.constant dense<0.000000e+00> : vector<2x16xf32>
    %69 = vector.multi_reduction <add>, %68, %cst_33 [2] : vector<2x16x12xf32> to vector<2x16xf32>
    %70 = vector.shape_cast %69 : vector<2x16xf32> to vector<2x16x1xf32>
    %71 = arith.negf %70 : vector<2x16x1xf32>
    %72 = math.exp %71 : vector<2x16x1xf32>
    %cst_34 = arith.constant 1.000000e+00 : f32
    %73 = vector.broadcast %cst_34 : f32 to vector<2x16x1xf32>
    %74 = arith.addf %73, %72 : vector<2x16x1xf32>
    %75 = arith.divf %73, %74 : vector<2x16x1xf32>
    %76 = vector.broadcast %75 : vector<2x16x1xf32> to vector<2x16x256xf32>
    %77 = arith.mulf %3, %76 : vector<2x16x256xf32>
    %78 = arith.negf %77 : vector<2x16x256xf32>
    %79 = math.exp %78 : vector<2x16x256xf32>
    %cst_35 = arith.constant 1.000000e+00 : f32
    %80 = vector.broadcast %cst_35 : f32 to vector<2x16x256xf32>
    %81 = arith.addf %80, %79 : vector<2x16x256xf32>
    %82 = arith.divf %80, %81 : vector<2x16x256xf32>
    %83 = arith.mulf %1, %82 : vector<2x16x256xf32>
    %84 = arith.negf %83 : vector<2x16x256xf32>
    %85 = math.exp %84 : vector<2x16x256xf32>
    %cst_36 = arith.constant 1.000000e+00 : f32
    %86 = vector.broadcast %cst_36 : f32 to vector<2x16x256xf32>
    %87 = arith.addf %86, %85 : vector<2x16x256xf32>
    %88 = arith.divf %86, %87 : vector<2x16x256xf32>
    %c0_37 = arith.constant 0 : index
    %c0_38 = arith.constant 0 : index
    %c0_39 = arith.constant 0 : index
    %c0_40 = arith.constant 0 : index
    %89 = vector.load %arg8[%c0_37, %c0_38, %c0_39, %c0_40] : memref<1x2x16x256xf32, #tpu.memory_space<vmem>>, vector<1x2x16x256xf32>
    %90 = vector.shape_cast %89 : vector<1x2x16x256xf32> to vector<2x16x256xf32>
    %91 = vector.shape_cast %88 : vector<2x16x256xf32> to vector<1x2x16x256xf32>
    tpu.vector_store %arg8[%c0_37, %c0_38, %c0_39, %c0_40], %91 {strides = array<i32>} : memref<1x2x16x256xf32, #tpu.memory_space<vmem>>, vector<1x2x16x256xf32>,
    return
  }
  func.func @transform_0(%arg0: i32) -> (i32, i32, i32, i32) {
    %c0_i32 = arith.constant 0 : i32
    %c0_i32_0 = arith.constant 0 : i32
    %c0_i32_1 = arith.constant 0 : i32
    %c0_i32_2 = arith.constant 0 : i32
    return %arg0, %c0_i32, %c0_i32_0, %c0_i32_1 : i32, i32, i32, i32
  }
  func.func @transform_1(%arg0: i32) -> (i32, i32, i32, i32) {
    %c0_i32 = arith.constant 0 : i32
    %c0_i32_0 = arith.constant 0 : i32
    %c0_i32_1 = arith.constant 0 : i32
    %c0_i32_2 = arith.constant 0 : i32
    return %arg0, %c0_i32, %c0_i32_0, %c0_i32_1 : i32, i32, i32, i32
  }
  func.func @transform_2(%arg0: i32) -> (i32, i32, i32) {
    %c0_i32 = arith.constant 0 : i32
    %c0_i32_0 = arith.constant 0 : i32
    %c0_i32_1 = arith.constant 0 : i32
    return %arg0, %c0_i32, %c0_i32_0 : i32, i32, i32
  }
  func.func @transform_3(%arg0: i32) -> (i32, i32, i32) {
    %c0_i32 = arith.constant 0 : i32
    %c0_i32_0 = arith.constant 0 : i32
    %c0_i32_1 = arith.constant 0 : i32
    return %arg0, %c0_i32, %c0_i32_0 : i32, i32, i32
  }
  func.func @transform_4(%arg0: i32) -> (i32, i32, i32) {
    %c0_i32 = arith.constant 0 : i32
    %c0_i32_0 = arith.constant 0 : i32
    %c0_i32_1 = arith.constant 0 : i32
    return %arg0, %c0_i32, %c0_i32_0 : i32, i32, i32
  }
  func.func @transform_5(%arg0: i32) -> (i32, i32, i32) {
    %c0_i32 = arith.constant 0 : i32
    %c0_i32_0 = arith.constant 0 : i32
    %c0_i32_1 = arith.constant 0 : i32
    return %arg0, %c0_i32, %c0_i32_0 : i32, i32, i32
  }
  func.func @transform_6(%arg0: i32) -> (i32, i32, i32) {
    %c0_i32 = arith.constant 0 : i32
    %c0_i32_0 = arith.constant 0 : i32
    %c0_i32_1 = arith.constant 0 : i32
    return %arg0, %c0_i32, %c0_i32_0 : i32, i32, i32
  }
  func.func @transform_7(%arg0: i32) -> (i32, i32, i32, i32) {
    %c0_i32 = arith.constant 0 : i32
    %c0_i32_0 = arith.constant 0 : i32
    %c0_i32_1 = arith.constant 0 : i32
    %c0_i32_2 = arith.constant 0 : i32
    return %arg0, %c0_i32, %c0_i32_0, %c0_i32_1 : i32, i32, i32, i32
  }
}

</mosaic_0001>

<bundles_post_ra>
// kernel: tpu_custom_call.1
= control target key start
LH: loop header
LB: loop body
LE: loop exit
PB: predicated region body
PF: predicated region fallthrough
CT: control target
= control target key end

     0   :  { %12 = vsyncpa [#allocation3], 0  ;;  %s1318_s0 = inlined_call_operand.hbm [shape: f32[1,2,16,256], index: 0, kind: input, shape index: {}]   ;;  %s1319_s1 = inlined_call_operand.hbm [shape: f32[1,2,16,256], index: 1, kind: input, shape index: {}]   ;;  %s1320_s2 = inlined_call_operand.vmem [shape: f32[1,16,1], index: 2, kind: input, shape index: {}]   ;;  %s1321_s3 = inlined_call_operand.vmem [shape: f32[1,16,12], index: 3, kind: input, shape index: {}]   ;;  %s1322_s4 = inlined_call_operand.vmem [shape: f32[1,1,12], index: 4, kind: input, shape index: {}]   ;;  %s1323_s5 = inlined_call_operand.vmem [shape: f32[1,1,12], index: 5, kind: input, shape index: {}]   ;;  %s1324_s6 = inlined_call_operand.vmem [shape: f32[1,16,12], index: 6, kind: input, shape index: {}]   ;;  %s1325_s7 = inlined_call_operand.hbm [shape: f32[1,2,16,256], index: 7, kind: output, shape index: {}]  }
   0x1   :  { %13 = vsyncpa [#allocation6], 0 }
   0x2   :  { %14 = vsyncpa [#allocation4], 0  ;;  %s19_s26 = sshll.u32 %s1318_s0, 4  ;;  %s952_s27 = smov [#allocation2]   ;;  %s20_s26 = int_to_ptr.hbm [resolvable:$true] %s19_s26 }
   0x3   :  { %s21_s28 = sshll.u32 %s952_s27, 4  ;;  %s32_s8 = sshll.u32 %s1319_s1, 4  ;;  %s22_s28 = int_to_ptr.vmem [resolvable:$true] %s21_s28  ;;  %s33_s8 = int_to_ptr.hbm [resolvable:$true] %s32_s8 }
   0x4   :  { %s953_s9 = smov 256   ;;  %s954_s10 = smov 16  }
   0x5   :  { %27 = dma.hbm_to_vmem [thread:$0]  %s20_s26, 1024, %s22_s28, [#allocation3], %s953_s9, %s953_s9, %s954_s10  }
   0x6   :  { %s955_s11 = smov [#allocation5]  }
   0x7   :  { %s34_s12 = sshll.u32 %s955_s11, 4  ;;  %s35_s12 = int_to_ptr.vmem [resolvable:$true] %s34_s12 }
   0x8   :  { %40 = dma.hbm_to_vmem [thread:$0]  %s33_s8, 1024, %s35_s12, [#allocation6], %s953_s9, %s953_s9, %s954_s10  }
   0x9   :  { %946 = dma.done.wait [#allocation3], 1024  }
   0xa   :  { %947 = vsyncadd [#allocation3], 4294966272 }
   0xb   :  { %948 = dma.done.wait [#allocation6], 1024  }
   0xc   :  { %949 = vsyncadd [#allocation6], 4294966272  ;;  %v956_v0 = vmov 0   ;;  %v75_v1 = vld [vmem:[%s1320_s2] sm:$0xff]  ;;  %v76_v2 = vld [vmem:[%s1320_s2 + $0x8] sm:$0xff]  ;;  %vm127_vm0 = vcmask 1041409  }
   0xd   :  { %777 = vset.pattern.permute.xlu0 %v956_v0  ;;  %v1017_v4 = vld [vmem:[#allocation5] sm:$0xff]  ;;  %v1019_v5 = vld [vmem:[#allocation5 + $0x8] sm:$0xff]  ;;  %v1025_v8 = vld [vmem:[#allocation5 + $0x10] sm:$0xff]  ;;  %vm132_vm1 = vcmask 1041408   ;;  %vm223_vm6 = vcmask 97280   ;;  %vm246_vm7 = vcmask 91136  }
   0xe   :  { %79 = vperm.xlu0 %777, %v75_v1   ;;  %v1021_v6 = vld [vmem:[#allocation5 + $0x20] sm:$0xff]  ;;  %v1023_v7 = vld [vmem:[#allocation5 + $0x28] sm:$0xff]  ;;  %v1027_v9 = vld [vmem:[#allocation5 + $0x18] sm:$0xff]  ;;  %s736_s26 = sshll.u32 %s1325_s7, 4  ;;  %s737_s26 = int_to_ptr.hbm [resolvable:$true] %s736_s26 }
   0xf   :  { %v1029_v10 = vld [vmem:[#allocation5 + $0x30] sm:$0xff]  ;;  %v1031_v11 = vld [vmem:[#allocation5 + $0x38] sm:$0xff] }
  0x16   :  { %84 = vperm.xlu0 %777, %v76_v2  }
  0x80   :  { %v80_v3 = vpop.permute.xlu0 %79 }
  0x81   :  { %v87_v12 = vmul.f32 %v80_v3, %v1017_v4  ;;  %v88_v13 = vmul.f32 %v80_v3, %v1019_v5  ;;  %v91_v14 = vmul.f32 %v80_v3, %v1021_v6  ;;  %v92_v15 = vmul.f32 %v80_v3, %v1023_v7 }
  0x88   :  { %v85_v16 = vpop.permute.xlu0 %84 }
  0x89   :  { %v89_v17 = vmul.f32 %v85_v16, %v1025_v8  ;;  %v90_v18 = vmul.f32 %v85_v16, %v1027_v9  ;;  %v93_v19 = vmul.f32 %v85_v16, %v1029_v10  ;;  %v94_v20 = vmul.f32 %v85_v16, %v1031_v11 }
  0x8b   :  { %v95_v21 = vadd.f32 %v89_v17, %v87_v12  ;;  %v102_v22 = vadd.f32 %v90_v18, %v88_v13  ;;  %v109_v23 = vadd.f32 %v93_v19, %v91_v14  ;;  %v116_v24 = vadd.f32 %v94_v20, %v92_v15 }
  0x8d   :  { %v96_v25 = vrot.slane %v95_v21, 4  ;;  %v103_v26 = vrot.slane %v102_v22, 4  ;;  %v110_v27 = vrot.slane %v109_v23, 4  ;;  %v117_v28 = vrot.slane %v116_v24, 4 }
  0x8f   :  { %v97_v29 = vadd.f32 %v96_v25, %v95_v21  ;;  %v104_v30 = vadd.f32 %v103_v26, %v102_v22  ;;  %v111_v31 = vadd.f32 %v110_v27, %v109_v23  ;;  %v118_v32 = vadd.f32 %v117_v28, %v116_v24 }
  0x91   :  { %v98_v33 = vrot.slane %v97_v29, 2  ;;  %v105_v34 = vrot.slane %v104_v30, 2  ;;  %v112_v35 = vrot.slane %v111_v31, 2  ;;  %v119_v36 = vrot.slane %v118_v32, 2 }
  0x93   :  { %v99_v37 = vadd.f32 %v98_v33, %v97_v29  ;;  %v106_v38 = vadd.f32 %v105_v34, %v104_v30  ;;  %v113_v39 = vadd.f32 %v112_v35, %v111_v31  ;;  %v120_v40 = vadd.f32 %v119_v36, %v118_v32 }
  0x95   :  { %v100_v41 = vrot.slane %v99_v37, 1  ;;  %v107_v42 = vrot.slane %v106_v38, 1  ;;  %v114_v43 = vrot.slane %v113_v39, 1  ;;  %v121_v44 = vrot.slane %v120_v40, 1 }
  0x97   :  { %v101_v45 = vadd.f32 %v100_v41, %v99_v37  ;;  %v108_v46 = vadd.f32 %v107_v42, %v106_v38  ;;  %v115_v47 = vadd.f32 %v114_v43, %v113_v39  ;;  %v122_v48 = vadd.f32 %v121_v44, %v120_v40 }
  0x99   :  { %v128_v49 = vsel %vm127_vm0, %v115_v47, %v101_v45  ;;  %v129_v50 = vsel %vm127_vm0, %v122_v48, %v108_v46 }
  0x9a   :  { %v133_v51 = vsel %vm132_vm1, %v128_v49, -inf  ;;  %v134_v52 = vsel %vm132_vm1, %v129_v50, -inf  ;;  %v217_v50 = vld [vmem:[%s1321_s3] sm:$0xff] }
  0x9b   :  { %v135_v53 = vmax.f32 %v133_v51, %v134_v52  ;;  %v218_v51 = vld [vmem:[%s1321_s3 + $0x8] sm:$0xff] }
  0x9d   :  { %136 = vmax.xlane.f32.xlu1 %v135_v53 }
 0x110   :  { %v137_v54 = vpop.xlane.xlu1 %136 }
 0x111   :  { %v139_v55 = vrot.slane %v137_v54, 1  ;;  %v142_v56 = vsub.f32 %v101_v45, %v137_v54  ;;  %v143_v57 = vsub.f32 %v108_v46, %v137_v54 }
 0x113   :  { %v144_v58 = vsub.f32 %v115_v47, %v139_v55  ;;  %v145_v59 = vsub.f32 %v122_v48, %v139_v55  ;;  %v146_v60 = vmul.f32 1.442695, %v142_v56  ;;  %v148_v61 = vmul.f32 1.442695, %v143_v57 }
 0x115   :  { %780 = vpow2.f32 %v146_v60  ;;  %v150_v62 = vmul.f32 1.442695, %v144_v58  ;;  %v152_v63 = vmul.f32 1.442695, %v145_v59 }
 0x116   :  { %782 = vpow2.f32 %v148_v61 }
 0x117   :  { %784 = vpow2.f32 %v150_v62 }
 0x118   :  { %786 = vpow2.f32 %v152_v63 }
 0x11b   :  { %v781_v0 = vpop.eup %780 }
 0x11c   :  { %v783_v1 = vpop.eup %782  ;;  %v169_v2 = vperm.slane %v781_v0, 0 }
 0x11d   :  { %v785_v3 = vpop.eup %784  ;;  %v170_v12 = vperm.slane %v783_v1, 0 }
 0x11e   :  { %v787_v13 = vpop.eup %786  ;;  %v173_v14 = vmul.f32 %v169_v2, %v1017_v4  ;;  %v171_v15 = vperm.slane %v785_v3, 0  ;;  %v158_v16 = vrot.slane %v785_v3, 7  ;;  %v175_v29 = vmul.f32 %v169_v2, %v1025_v8 }
 0x11f   :  { %v174_v17 = vmul.f32 %v170_v12, %v1019_v5  ;;  %v172_v18 = vperm.slane %v787_v13, 0  ;;  %v160_v19 = vrot.slane %v787_v13, 7  ;;  %v176_v30 = vmul.f32 %v170_v12, %v1027_v9 }
 0x120   :  { %v177_v20 = vmul.f32 %v171_v15, %v1021_v6  ;;  %v159_v21 = vsel %vm127_vm0, %v158_v16, %v781_v0  ;;  %v179_v31 = vmul.f32 %v171_v15, %v1029_v10 }
 0x121   :  { %v181_v22 = vadd.f32 %v174_v17, %v173_v14  ;;  %v178_v23 = vmul.f32 %v172_v18, %v1023_v7  ;;  %v161_v24 = vsel %vm127_vm0, %v160_v19, %v783_v1  ;;  %v164_v25 = vsel %vm132_vm1, %v159_v21, 0.0 }
 0x122   :  { %v165_v26 = vsel %vm132_vm1, %v161_v24, 0.0  ;;  %v180_v32 = vmul.f32 %v172_v18, %v1031_v11  ;;  %v184_v33 = vadd.f32 %v176_v30, %v175_v29 }
 0x123   :  { %182 = vadd.xlane.f32.xlu2 %v181_v22  ;;  %v187_v27 = vadd.f32 %v178_v23, %v177_v20  ;;  %v166_v28 = vadd.f32 %v165_v26, %v164_v25  ;;  %v957_v26 = vmov 12.0  }
 0x124   :  { %v190_v34 = vadd.f32 %v180_v32, %v179_v31 }
 0x125   :  { %188 = vadd.xlane.f32.xlu0 %v187_v27  ;;  %167 = vadd.xlane.f32.xlu1 %v166_v28 }
 0x12b   :  { %185 = vadd.xlane.f32.xlu2 %v184_v33 }
 0x12d   :  { %191 = vadd.xlane.f32.xlu1 %v190_v34 }
 0x196   :  { %v183_v38 = vpop.xlane.xlu2 %182 }
 0x198   :  { %v168_v35 = vpop.xlane.xlu1 %167  ;;  %v189_v47 = vpop.xlane.xlu0 %188 }
 0x199   :  { %788 = vrcp.f32 %v168_v35  ;;  %v204_v40 = vand.u32 2147483648, %v168_v35  ;;  %v202_v42 = vand.u32 2147483647, %v168_v35  ;;  %vm198_vm3 = vweird.f32 %v168_v35 }
 0x19a   :  { %790 = vrcp.f32 %v957_v26 }
 0x19b   :  { %v205_v44 = vor.u32 1.1754944e-38, %v204_v40  ;;  %vm203_vm5 = vcmp.eq.f32.partialorder %v202_v42, 8.507059e+37 }
 0x19e   :  { %v186_v52 = vpop.xlane.xlu2 %185 }
 0x19f   :  { %v789_v36 = vpop.eup %788 }
 0x1a0   :  { %v194_v37 = vmul.f32 %v789_v36, %v168_v35  ;;  %vm199_vm2 = vweird.f32 %v789_v36  ;;  %v192_v53 = vpop.xlane.xlu1 %191  ;;  %v791_v27 = vpop.eup %790 }
 0x1a1   :  { %vm200_vm4 = vmor %vm198_vm3, %vm199_vm2  ;;  %v251_v28 = vmul.f32 12.0, %v791_v27  ;;  %vm255_vm8 = vweird.f32 %v791_v27 }
 0x1a2   :  { %v195_v39 = vsub.f32 1.0, %v194_v37 }
 0x1a3   :  { %v252_v29 = vsub.f32 1.0, %v251_v28 }
 0x1a4   :  { %v196_v41 = vmul.f32 %v789_v36, %v195_v39 }
 0x1a5   :  { %v253_v30 = vmul.f32 %v791_v27, %v252_v29 }
 0x1a6   :  { %v197_v43 = vadd.f32 %v789_v36, %v196_v41 }
 0x1a7   :  { %v254_v31 = vadd.f32 %v791_v27, %v253_v30 }
 0x1a8   :  { %v201_v45 = vsel %vm200_vm4, %v789_v36, %v197_v43 }
 0x1a9   :  { %v206_v46 = vsel %vm203_vm5, %v205_v44, %v201_v45  ;;  %v256_v32 = vsel %vm255_vm8, %v791_v27, %v254_v31 }
 0x1aa   :  { %v209_v48 = vperm.slane %v206_v46, 0  ;;  %v210_v49 = vperm.slane %v206_v46, 1 }
 0x1ac   :  { %v213_v54 = vmul.f32 %v209_v48, %v183_v38  ;;  %v214_v55 = vmul.f32 %v209_v48, %v186_v52  ;;  %v215_v56 = vmul.f32 %v210_v49, %v189_v47  ;;  %v216_v57 = vmul.f32 %v210_v49, %v192_v53  ;;  %v778_v52 = vld [vmem:[%s1322_s4] ss:$0 sm:$0xff]  ;;  %s958_s4 = smov [#allocation7]  }
 0x1ae   :  { %v219_v58 = vmul.f32 %v217_v50, %v213_v54  ;;  %v220_v59 = vmul.f32 %v218_v51, %v214_v55  ;;  %v221_v60 = vmul.f32 %v217_v50, %v215_v56  ;;  %v222_v61 = vmul.f32 %v218_v51, %v216_v57  ;;  %v779_v56 = vld [vmem:[%s1323_s5] ss:$0 sm:$0xff]  ;;  %s734_s5 = sshll.u32 %s958_s4, 4  ;;  %s735_s5 = int_to_ptr.vmem [resolvable:$true] %s734_s5 }
 0x1b0   :  { %v224_v62 = vsel %vm223_vm6, %v219_v58, 0.0  ;;  %v225_v63 = vsel %vm223_vm6, %v220_v59, 0.0  ;;  %v233_v0 = vsel %vm223_vm6, %v221_v60, 0.0  ;;  %v234_v1 = vsel %vm223_vm6, %v222_v61, 0.0 }
 0x1b1   :  { %v226_v2 = vadd.f32 %v225_v63, %v224_v62  ;;  %v235_v3 = vadd.f32 %v234_v1, %v233_v0  ;;  %v307_v63 = vld [vmem:[%s1324_s6 + $0x8] sm:$0xff]  ;;  %v306_v0 = vld [vmem:[%s1324_s6] sm:$0xff] }
 0x1b3   :  { %v227_v12 = vrot.slane %v226_v2, 4  ;;  %v236_v13 = vrot.slane %v235_v3, 4 }
 0x1b5   :  { %v228_v14 = vadd.f32 %v227_v12, %v226_v2  ;;  %v237_v15 = vadd.f32 %v236_v13, %v235_v3 }
 0x1b7   :  { %v229_v16 = vrot.slane %v228_v14, 2  ;;  %v238_v17 = vrot.slane %v237_v15, 2 }
 0x1b9   :  { %v230_v18 = vadd.f32 %v229_v16, %v228_v14  ;;  %v239_v19 = vadd.f32 %v238_v17, %v237_v15 }
 0x1bb   :  { %v231_v20 = vrot.slane %v230_v18, 1  ;;  %v240_v21 = vrot.slane %v239_v19, 1 }
 0x1bd   :  { %v232_v22 = vadd.f32 %v231_v20, %v230_v18  ;;  %v241_v23 = vadd.f32 %v240_v21, %v239_v19 }
 0x1bf   :  { %v244_v24 = vsel %vm127_vm0, %v241_v23, %v232_v22 }
 0x1c0   :  { %v247_v25 = vsel %vm246_vm7, %v244_v24, 0.0 }
 0x1c1   :  { %248 = vadd.xlane.f32.xlu2 %v247_v25 }
 0x234   :  { %v249_v33 = vpop.xlane.xlu2 %248 }
 0x235   :  { %v257_v34 = vmul.f32 %v256_v32, %v249_v33 }
 0x237   :  { %v259_v35 = vrot.slane %v257_v34, 1  ;;  %v262_v36 = vsub.f32 %v232_v22, %v257_v34 }
 0x239   :  { %v263_v37 = vsub.f32 %v241_v23, %v259_v35  ;;  %v264_v39 = vmul.f32 %v262_v36, %v262_v36 }
 0x23b   :  { %v265_v38 = vmul.f32 %v263_v37, %v263_v37 }
 0x23d   :  { %v268_v40 = vrot.slane %v265_v38, 7 }
 0x23f   :  { %v269_v41 = vsel %vm127_vm0, %v268_v40, %v264_v39 }
 0x240   :  { %v271_v42 = vsel %vm246_vm7, %v269_v41, 0.0 }
 0x241   :  { %272 = vadd.xlane.f32.xlu1 %v271_v42 }
 0x2b4   :  { %v273_v43 = vpop.xlane.xlu1 %272 }
 0x2b5   :  { %v274_v44 = vmul.f32 %v273_v43, %v256_v32 }
 0x2b7   :  { %v275_v45 = vadd.f32 1e-05, %v274_v44 }
 0x2b9   :  { %792 = vrsqrt.f32 %v275_v45  ;;  %vm282_vm10 = vweird.f32 %v275_v45 }
 0x2bf   :  { %v793_v46 = vpop.eup %792 }
 0x2c0   :  { %v277_v47 = vmul.f32 %v793_v46, %v275_v45  ;;  %vm283_vm9 = vweird.f32 %v793_v46 }
 0x2c1   :  { %vm284_vm11 = vmor %vm282_vm10, %vm283_vm9 }
 0x2c2   :  { %v278_v48 = vmul.f32 %v793_v46, %v277_v47 }
 0x2c4   :  { %v279_v49 = vmul.f32 0.5, %v278_v48 }
 0x2c6   :  { %v280_v50 = vsub.f32 1.5, %v279_v49 }
 0x2c8   :  { %v281_v51 = vmul.f32 %v793_v46, %v280_v50 }
 0x2ca   :  { %v285_v53 = vsel %vm284_vm11, %v793_v46, %v281_v51 }
 0x2cb   :  { %v287_v54 = vrot.slane %v285_v53, 1  ;;  %v290_v55 = vmul.f32 %v285_v53, %v262_v36 }
 0x2cd   :  { %v296_v57 = vmul.f32 %v778_v52, %v290_v55  ;;  %v291_v58 = vmul.f32 %v287_v54, %v263_v37 }
 0x2cf   :  { %v302_v59 = vadd.f32 %v779_v56, %v296_v57  ;;  %v297_v60 = vmul.f32 %v778_v52, %v291_v58 }
 0x2d1   :  { %v304_v61 = vmax.f32 %v302_v59, 0.0  ;;  %v303_v62 = vadd.f32 %v779_v56, %v297_v60 }
 0x2d3   :  { %v308_v1 = vperm.slane %v304_v61, 0  ;;  %v305_v2 = vmax.f32 %v303_v62, 0.0 }
 0x2d5   :  { %v311_v3 = vmul.f32 %v308_v1, %v307_v63  ;;  %v310_v12 = vmul.f32 %v308_v1, %v306_v0  ;;  %v309_v15 = vperm.slane %v305_v2, 0 }
 0x2d7   :  { %v317_v13 = vsel %vm223_vm6, %v311_v3, 0.0  ;;  %v314_v14 = vsel %vm223_vm6, %v310_v12, 0.0  ;;  %v313_v16 = vmul.f32 %v309_v15, %v307_v63  ;;  %v312_v17 = vmul.f32 %v309_v15, %v306_v0 }
 0x2d8   :  { %318 = vadd.xlane.f32.xlu1 %v317_v13  ;;  %315 = vadd.xlane.f32.xlu2 %v314_v14 }
 0x2d9   :  { %v323_v18 = vsel %vm223_vm6, %v313_v16, 0.0  ;;  %v320_v19 = vsel %vm223_vm6, %v312_v17, 0.0 }
 0x2e0   :  { %324 = vadd.xlane.f32.xlu1 %v323_v18  ;;  %321 = vadd.xlane.f32.xlu2 %v320_v19 }
 0x34b   :  { %v319_v20 = vpop.xlane.xlu1 %318  ;;  %v316_v21 = vpop.xlane.xlu2 %315 }
 0x34c   :  { %v751_v22 = vmul.f32 -1.442695, %v319_v20  ;;  %v750_v23 = vmul.f32 -1.442695, %v316_v21 }
 0x34e   :  { %794 = vpow2.f32 %v751_v22 }
 0x34f   :  { %796 = vpow2.f32 %v750_v23 }
 0x353   :  { %v325_v24 = vpop.xlane.xlu1 %324  ;;  %v322_v25 = vpop.xlane.xlu2 %321 }
 0x354   :  { %v795_v26 = vpop.eup %794  ;;  %v753_v27 = vmul.f32 -1.442695, %v325_v24  ;;  %v752_v30 = vmul.f32 -1.442695, %v322_v25 }
 0x355   :  { %v797_v28 = vpop.eup %796  ;;  %v339_v29 = vadd.f32 1.0, %v795_v26 }
 0x356   :  { %v338_v31 = vadd.f32 1.0, %v797_v28  ;;  %798 = vpow2.f32 %v753_v27 }
 0x357   :  { %800 = vrcp.f32 %v339_v29  ;;  %v366_v41 = vand.u32 2147483647, %v339_v29  ;;  %v368_v42 = vand.u32 2147483648, %v339_v29  ;;  %vm362_vm14 = vweird.f32 %v339_v29 }
 0x358   :  { %802 = vrcp.f32 %v338_v31  ;;  %v353_v45 = vand.u32 2147483648, %v338_v31  ;;  %v351_v47 = vand.u32 2147483647, %v338_v31  ;;  %vm347_vm0 = vweird.f32 %v338_v31 }
 0x359   :  { %804 = vpow2.f32 %v752_v30  ;;  %v369_v50 = vor.u32 1.1754944e-38, %v368_v42  ;;  %vm367_vm1 = vcmp.eq.f32.partialorder %v366_v41, 8.507059e+37 }
 0x35a   :  { %v354_v53 = vor.u32 1.1754944e-38, %v353_v45  ;;  %vm352_vm3 = vcmp.eq.f32.partialorder %v351_v47, 8.507059e+37 }
 0x35c   :  { %v799_v32 = vpop.eup %798 }
 0x35d   :  { %v801_v33 = vpop.eup %800  ;;  %v341_v34 = vadd.f32 1.0, %v799_v32 }
 0x35e   :  { %v803_v35 = vpop.eup %802  ;;  %v358_v36 = vmul.f32 %v801_v33, %v339_v29  ;;  %vm363_vm12 = vweird.f32 %v801_v33 }
 0x35f   :  { %v805_v37 = vpop.eup %804  ;;  %v343_v38 = vmul.f32 %v803_v35, %v338_v31  ;;  %806 = vrcp.f32 %v341_v34  ;;  %vm348_vm13 = vweird.f32 %v803_v35  ;;  %vm364_vm15 = vmor %vm362_vm14, %vm363_vm12  ;;  %v396_v57 = vand.u32 2147483647, %v341_v34 }
 0x360   :  { %v359_v39 = vsub.f32 1.0, %v358_v36  ;;  %v1087_v40 = vadd.f32 1.0, %v805_v37  ;;  %vm349_vm2 = vmor %vm347_vm0, %vm348_vm13  ;;  %v398_v1 = vand.u32 2147483648, %v341_v34  ;;  %vm392_vm5 = vweird.f32 %v341_v34 }
 0x361   :  { %v344_v43 = vsub.f32 1.0, %v343_v38  ;;  %vm397_vm6 = vcmp.eq.f32.partialorder %v396_v57, 8.507059e+37 }
 0x362   :  { %v360_v44 = vmul.f32 %v801_v33, %v359_v39  ;;  %808 = vrcp.f32 %v1087_v40  ;;  %vm377_vm9 = vweird.f32 %v1087_v40  ;;  %v383_v17 = vand.u32 2147483648, %v1087_v40 }
 0x363   :  { %v345_v46 = vmul.f32 %v803_v35, %v344_v43  ;;  %v381_v20 = vand.u32 2147483647, %v1087_v40 }
 0x364   :  { %v361_v48 = vadd.f32 %v801_v33, %v360_v44  ;;  %v384_v26 = vor.u32 1.1754944e-38, %v383_v17 }
 0x365   :  { %v807_v49 = vpop.eup %806  ;;  %v346_v51 = vadd.f32 %v803_v35, %v345_v46  ;;  %vm382_vm11 = vcmp.eq.f32.partialorder %v381_v20, 8.507059e+37 }
 0x366   :  { %v365_v52 = vsel %vm364_vm15, %v801_v33, %v361_v48  ;;  %v388_v54 = vmul.f32 %v807_v49, %v341_v34  ;;  %vm393_vm4 = vweird.f32 %v807_v49 }
 0x367   :  { %v370_v55 = vsel %vm367_vm1, %v369_v50, %v365_v52  ;;  %v350_v56 = vsel %vm349_vm2, %v803_v35, %v346_v51  ;;  %vm394_vm7 = vmor %vm392_vm5, %vm393_vm4 }
 0x368   :  { %v809_v58 = vpop.eup %808  ;;  %v404_v59 = vmul.f32 %v370_v55, %v1025_v8  ;;  %v405_v60 = vmul.f32 %v370_v55, %v1027_v9  ;;  %v355_v61 = vsel %vm352_vm3, %v354_v53, %v350_v56  ;;  %v389_v62 = vsub.f32 1.0, %v388_v54 }
 0x369   :  { %v402_v63 = vmul.f32 %v355_v61, %v1017_v4  ;;  %v403_v0 = vmul.f32 %v355_v61, %v1019_v5  ;;  %v373_v2 = vmul.f32 %v809_v58, %v1087_v40  ;;  %v399_v9 = vor.u32 1.1754944e-38, %v398_v1 }
 0x36a   :  { %v756_v3 = vmul.f32 -1.442695, %v404_v59  ;;  %v757_v12 = vmul.f32 -1.442695, %v405_v60  ;;  %v390_v13 = vmul.f32 %v807_v49, %v389_v62  ;;  %vm378_vm8 = vweird.f32 %v809_v58 }
 0x36b   :  { %v754_v14 = vmul.f32 -1.442695, %v402_v63  ;;  %v755_v15 = vmul.f32 -1.442695, %v403_v0  ;;  %v374_v16 = vsub.f32 1.0, %v373_v2  ;;  %vm379_vm10 = vmor %vm377_vm9, %vm378_vm8 }
 0x36c   :  { %810 = vpow2.f32 %v756_v3  ;;  %v391_v8 = vadd.f32 %v807_v49, %v390_v13 }
 0x36d   :  { %812 = vpow2.f32 %v757_v12  ;;  %v375_v4 = vmul.f32 %v809_v58, %v374_v16  ;;  %v61_v16 = vld [vmem:[#allocation2 + $0x10] sm:$0xff] }
 0x36e   :  { %814 = vpow2.f32 %v754_v14  ;;  %v395_v5 = vsel %vm394_vm7, %v807_v49, %v391_v8 }
 0x36f   :  { %816 = vpow2.f32 %v755_v15  ;;  %v400_v18 = vsel %vm397_vm6, %v399_v9, %v395_v5  ;;  %v376_v19 = vadd.f32 %v809_v58, %v375_v4  ;;  %v62_v5 = vld [vmem:[#allocation2 + $0x18] sm:$0xff] }
 0x370   :  { %v408_v21 = vmul.f32 %v400_v18, %v1029_v10  ;;  %v409_v22 = vmul.f32 %v400_v18, %v1031_v11 }
 0x371   :  { %v380_v23 = vsel %vm379_vm10, %v809_v58, %v376_v19 }
 0x372   :  { %v811_v24 = vpop.eup %810  ;;  %v760_v25 = vmul.f32 -1.442695, %v408_v21  ;;  %v761_v31 = vmul.f32 -1.442695, %v409_v22  ;;  %v385_v32 = vsel %vm382_vm11, %v384_v26, %v380_v23 }
 0x373   :  { %v813_v27 = vpop.eup %812  ;;  %v1100_v28 = vadd.f32 1.0, %v811_v24  ;;  %v406_v34 = vmul.f32 %v385_v32, %v1021_v6  ;;  %v407_v41 = vmul.f32 %v385_v32, %v1023_v7 }
 0x374   :  { %v815_v29 = vpop.eup %814  ;;  %v1102_v30 = vadd.f32 1.0, %v813_v27  ;;  %818 = vpow2.f32 %v760_v25 }
 0x375   :  { %v817_v33 = vpop.eup %816  ;;  %820 = vrcp.f32 %v1100_v28  ;;  %v1106_v10 = vadd.f32 1.0, %v815_v29  ;;  %v481_v35 = vand.u32 2147483647, %v1100_v28  ;;  %v483_v36 = vand.u32 2147483648, %v1100_v28 }
 0x376   :  { %822 = vrcp.f32 %v1102_v30  ;;  %v1108_v11 = vadd.f32 1.0, %v817_v33  ;;  %v496_v37 = vand.u32 2147483647, %v1102_v30  ;;  %v498_v39 = vand.u32 2147483648, %v1102_v30 }
 0x377   :  { %824 = vpow2.f32 %v761_v31  ;;  %v453_v40 = vand.u32 2147483648, %v1106_v10  ;;  %vm477_vm12 = vweird.f32 %v1100_v28  ;;  %vm492_vm13 = vweird.f32 %v1102_v30  ;;  %v59_v31 = vld [vmem:[#allocation2] sm:$0xff] }
 0x378   :  { %826 = vrcp.f32 %v1106_v10  ;;  %v758_v43 = vmul.f32 -1.442695, %v406_v34  ;;  %vm1124_vm14 = vcmp.eq.f32.partialorder %v481_v35, 8.507059e+37  ;;  %v484_v47 = vor.u32 1.1754944e-38, %v483_v36  ;;  %v60_v35 = vld [vmem:[#allocation2 + $0x8] sm:$0xff] }
 0x379   :  { %828 = vrcp.f32 %v1108_v11  ;;  %v451_v48 = vand.u32 2147483647, %v1106_v10  ;;  %v468_v7 = vand.u32 2147483648, %v1108_v11  ;;  %vm1131_vm15 = vcmp.eq.f32.partialorder %v496_v37, 8.507059e+37 }
 0x37a   :  { %v819_v38 = vpop.eup %818  ;;  %v466_v51 = vand.u32 2147483647, %v1108_v11  ;;  %v499_v54 = vor.u32 1.1754944e-38, %v498_v39  ;;  %vm447_vm0 = vweird.f32 %v1106_v10  ;;  %v454_v55 = vor.u32 1.1754944e-38, %v453_v40 }
 0x37b   :  { %v821_v42 = vpop.eup %820  ;;  %v1121_v6 = vadd.f32 1.0, %v819_v38  ;;  %vm462_vm2 = vweird.f32 %v1108_v11  ;;  %vm1142_vm3 = vcmp.eq.f32.partialorder %v451_v48, 8.507059e+37  ;;  %v469_v63 = vor.u32 1.1754944e-38, %v468_v7 }
 0x37c   :  { %v823_v44 = vpop.eup %822  ;;  %v473_v45 = vmul.f32 %v821_v42, %v1100_v28  ;;  %vm478_vm1 = vweird.f32 %v821_v42  ;;  %vm1148_vm5 = vcmp.eq.f32.partialorder %v466_v51, 8.507059e+37  ;;  %v759_v4 = vmul.f32 -1.442695, %v407_v41 }
 0x37d   :  { %v488_v49 = vmul.f32 %v823_v44, %v1102_v30  ;;  %830 = vrcp.f32 %v1121_v6  ;;  %v825_v52 = vpop.eup %824  ;;  %v541_v0 = vand.u32 2147483647, %v1121_v6  ;;  %vm493_vm4 = vweird.f32 %v823_v44  ;;  %vm479_vm7 = vmor %vm477_vm12, %vm478_vm1 }
 0x37e   :  { %v474_v53 = vsub.f32 1.0, %v473_v45  ;;  %v827_v56 = vpop.eup %826  ;;  %v1139_v58 = vadd.f32 1.0, %v825_v52  ;;  %832 = vpow2.f32 %v758_v43  ;;  %v543_v12 = vand.u32 2147483648, %v1121_v6  ;;  %vm494_vm9 = vmor %vm492_vm13, %vm493_vm4 }
 0x37f   :  { %v489_v57 = vsub.f32 1.0, %v488_v49  ;;  %v829_v59 = vpop.eup %828  ;;  %v443_v61 = vmul.f32 %v827_v56, %v1106_v10  ;;  %vm537_vm6 = vweird.f32 %v1121_v6  ;;  %vm448_vm8 = vweird.f32 %v827_v56 }
 0x380   :  { %v475_v60 = vmul.f32 %v821_v42, %v474_v53  ;;  %v458_v2 = vmul.f32 %v829_v59, %v1108_v11  ;;  %834 = vrcp.f32 %v1139_v58  ;;  %vm463_vm10 = vweird.f32 %v829_v59  ;;  %vm449_vm12 = vmor %vm447_vm0, %vm448_vm8  ;;  %v65_v11 = vld [vmem:[#allocation2 + $0x30] sm:$0xff] }
 0x381   :  { %v490_v1 = vmul.f32 %v823_v44, %v489_v57  ;;  %v444_v14 = vsub.f32 1.0, %v443_v61  ;;  %vm1162_vm11 = vcmp.eq.f32.partialorder %v541_v0, 8.507059e+37  ;;  %v544_v25 = vor.u32 1.1754944e-38, %v543_v12  ;;  %v66_v57 = vld [vmem:[#allocation2 + $0x38] sm:$0xff] }
 0x382   :  { %v476_v13 = vadd.f32 %v821_v42, %v475_v60  ;;  %v459_v9 = vsub.f32 1.0, %v458_v2  ;;  %836 = vpow2.f32 %v759_v4  ;;  %v558_v49 = vand.u32 2147483648, %v1139_v58 }
 0x383   :  { %v831_v15 = vpop.eup %830  ;;  %v491_v8 = vadd.f32 %v823_v44, %v490_v1  ;;  %v445_v18 = vmul.f32 %v827_v56, %v444_v14  ;;  %vm552_vm1 = vweird.f32 %v1139_v58 }
 0x384   :  { %v480_v17 = vsel %vm479_vm7, %v821_v42, %v476_v13  ;;  %v533_v19 = vmul.f32 %v831_v15, %v1121_v6  ;;  %v833_v21 = vpop.eup %832  ;;  %v460_v24 = vmul.f32 %v829_v59, %v459_v9  ;;  %vm538_vm13 = vweird.f32 %v831_v15 }
 0x385   :  { %v485_v22 = vsel %vm1124_vm14, %v484_v47, %v480_v17  ;;  %v495_v23 = vsel %vm494_vm9, %v823_v44, %v491_v8  ;;  %v446_v28 = vadd.f32 %v827_v56, %v445_v18  ;;  %vm464_vm14 = vmor %vm462_vm2, %vm463_vm10  ;;  %v1176_v38 = vadd.f32 1.0, %v833_v21 }
 0x386   :  { %v500_v26 = vsel %vm1131_vm15, %v499_v54, %v495_v23  ;;  %v564_v27 = vmul.f32 %v485_v22, %v61_v16  ;;  %v534_v29 = vsub.f32 1.0, %v533_v19  ;;  %v461_v32 = vadd.f32 %v829_v59, %v460_v24  ;;  %v835_v33 = vpop.eup %834  ;;  %vm539_vm15 = vmor %vm537_vm6, %vm538_vm13 }
 0x387   :  { %v565_v30 = vmul.f32 %v500_v26, %v62_v5  ;;  %v450_v36 = vsel %vm449_vm12, %v827_v56, %v446_v28  ;;  %v548_v41 = vmul.f32 %v835_v33, %v1139_v58  ;;  %v556_v47 = vand.u32 2147483647, %v1139_v58 }
 0x388   :  { %v764_v34 = vmul.f32 -1.442695, %v564_v27  ;;  %v535_v37 = vmul.f32 %v831_v15, %v534_v29  ;;  %v455_v40 = vsel %vm1142_vm3, %v454_v55, %v450_v36  ;;  %v465_v10 = vsel %vm464_vm14, %v829_v59, %v461_v32  ;;  %v837_v50 = vpop.eup %836  ;;  %v63_v32 = vld [vmem:[#allocation2 + $0x20] sm:$0xff] }
 0x389   :  { %v765_v39 = vmul.f32 -1.442695, %v565_v30  ;;  %v470_v42 = vsel %vm1148_vm5, %v469_v63, %v465_v10  ;;  %v562_v43 = vmul.f32 %v455_v40, %v59_v31  ;;  %v549_v46 = vsub.f32 1.0, %v548_v41 }
 0x38a   :  { %838 = vpow2.f32 %v764_v34  ;;  %v536_v44 = vadd.f32 %v831_v15, %v535_v37  ;;  %v563_v45 = vmul.f32 %v470_v42, %v60_v35  ;;  %vm553_vm0 = vweird.f32 %v835_v33 }
 0x38b   :  { %840 = vpow2.f32 %v765_v39  ;;  %v762_v48 = vmul.f32 -1.442695, %v562_v43  ;;  %v550_v53 = vmul.f32 %v835_v33, %v549_v46  ;;  %v1191_v6 = vadd.f32 1.0, %v837_v50  ;;  %vm554_vm2 = vmor %vm552_vm1, %vm553_vm0  ;;  %v64_v46 = vld [vmem:[#allocation2 + $0x28] sm:$0xff] }
 0x38c   :  { %v540_v7 = vsel %vm539_vm15, %v831_v15, %v536_v44  ;;  %842 = vrcp.f32 %v1176_v38  ;;  %v763_v51 = vmul.f32 -1.442695, %v563_v45  ;;  %v559_v59 = vor.u32 1.1754944e-38, %v558_v49 }
 0x38d   :  { %v545_v52 = vsel %vm1162_vm11, %v544_v25, %v540_v7  ;;  %844 = vpow2.f32 %v762_v48  ;;  %v551_v55 = vadd.f32 %v835_v33, %v550_v53  ;;  %v511_v61 = vand.u32 2147483647, %v1176_v38 }
 0x38e   :  { %v568_v54 = vmul.f32 %v545_v52, %v65_v11  ;;  %846 = vpow2.f32 %v763_v51  ;;  %vm557_vm3 = vcmp.eq.f32.partialorder %v556_v47, 8.507059e+37  ;;  %v513_v1 = vand.u32 2147483648, %v1176_v38 }
 0x38f   :  { %848 = vrcp.f32 %v1191_v6  ;;  %v555_v0 = vsel %vm554_vm2, %v835_v33, %v551_v55  ;;  %v526_v14 = vand.u32 2147483647, %v1191_v6  ;;  %vm507_vm4 = vweird.f32 %v1176_v38 }
 0x390   :  { %v839_v56 = vpop.eup %838  ;;  %v768_v60 = vmul.f32 -1.442695, %v568_v54  ;;  %v560_v58 = vsel %vm557_vm3, %v559_v59, %v555_v0  ;;  %vm1205_vm5 = vcmp.eq.f32.partialorder %v511_v61, 8.507059e+37  ;;  %v528_v8 = vand.u32 2147483648, %v1191_v6 }
 0x391   :  { %v841_v62 = vpop.eup %840  ;;  %v1196_v63 = vadd.f32 1.0, %v839_v56  ;;  %v569_v12 = vmul.f32 %v560_v58, %v66_v57  ;;  %v514_v18 = vor.u32 1.1754944e-38, %v513_v1  ;;  %vm522_vm7 = vweird.f32 %v1191_v6 }
 0x392   :  { %v843_v2 = vpop.eup %842  ;;  %v1199_v3 = vadd.f32 1.0, %v841_v62  ;;  %850 = vpow2.f32 %v768_v60  ;;  %vm1218_vm8 = vcmp.eq.f32.partialorder %v526_v14, 8.507059e+37  ;;  %v529_v25 = vor.u32 1.1754944e-38, %v528_v8 }
 0x393   :  { %852 = vrcp.f32 %v1196_v63  ;;  %v503_v13 = vmul.f32 %v843_v2, %v1176_v38  ;;  %v845_v15 = vpop.eup %844  ;;  %v769_v5 = vmul.f32 -1.442695, %v569_v12  ;;  %vm508_vm6 = vweird.f32 %v843_v2 }
 0x394   :  { %v847_v9 = vpop.eup %846  ;;  %v1210_v4 = vadd.f32 1.0, %v845_v15  ;;  %854 = vrcp.f32 %v1199_v3  ;;  %v641_v27 = vand.u32 2147483647, %v1196_v63  ;;  %vm509_vm9 = vmor %vm507_vm4, %vm508_vm6  ;;  %vm637_vm10 = vweird.f32 %v1196_v63 }
 0x395   :  { %v504_v17 = vsub.f32 1.0, %v503_v13  ;;  %v849_v19 = vpop.eup %848  ;;  %v1213_v20 = vadd.f32 1.0, %v847_v9  ;;  %v643_v34 = vand.u32 2147483648, %v1196_v63  ;;  %v656_v35 = vand.u32 2147483647, %v1199_v3 }
 0x396   :  { %856 = vrcp.f32 %v1210_v4  ;;  %v518_v22 = vmul.f32 %v849_v19, %v1191_v6  ;;  %v613_v26 = vand.u32 2147483648, %v1210_v4  ;;  %v611_v33 = vand.u32 2147483647, %v1210_v4 }
 0x397   :  { %v505_v21 = vmul.f32 %v843_v2, %v504_v17  ;;  %858 = vrcp.f32 %v1213_v20  ;;  %vm523_vm11 = vweird.f32 %v849_v19  ;;  %vm607_vm12 = vweird.f32 %v1210_v4 }
 0x398   :  { %v851_v24 = vpop.eup %850  ;;  %860 = vpow2.f32 %v769_v5  ;;  %v519_v31 = vsub.f32 1.0, %v518_v22  ;;  %v614_v38 = vor.u32 1.1754944e-38, %v613_v26  ;;  %v626_v10 = vand.u32 2147483647, %v1213_v20  ;;  %vm524_vm15 = vmor %vm522_vm7, %vm523_vm11 }
 0x399   :  { %v1225_v28 = vpop.eup %852  ;;  %v1227_v29 = vadd.f32 1.0, %v851_v24  ;;  %v506_v30 = vadd.f32 %v843_v2, %v505_v21  ;;  %vm622_vm13 = vweird.f32 %v1213_v20  ;;  %v628_v45 = vand.u32 2147483648, %v1213_v20 }
 0x39a   :  { %v520_v37 = vmul.f32 %v849_v19, %v519_v31  ;;  %v1237_v39 = vpop.eup %854  ;;  %v633_v41 = vmul.f32 %v1225_v28, %v1196_v63  ;;  %vm638_vm14 = vweird.f32 %v1225_v28  ;;  %vm1252_vm1 = vcmp.eq.f32.partialorder %v611_v33, 8.507059e+37 }
 0x39b   :  { %862 = vrcp.f32 %v1227_v29  ;;  %v510_v36 = vsel %vm509_vm9, %v843_v2, %v506_v30  ;;  %vm1256_vm2 = vcmp.eq.f32.partialorder %v641_v27, 8.507059e+37  ;;  %v644_v54 = vor.u32 1.1754944e-38, %v643_v34 }
 0x39c   :  { %v515_v40 = vsel %vm1205_vm5, %v514_v18, %v510_v36  ;;  %v857_v42 = vpop.eup %856  ;;  %v521_v43 = vadd.f32 %v849_v19, %v520_v37  ;;  %v634_v7 = vsub.f32 1.0, %v633_v41  ;;  %vm652_vm3 = vweird.f32 %v1199_v3  ;;  %vm639_vm5 = vmor %vm637_vm10, %vm638_vm14 }
 0x39d   :  { %v566_v44 = vmul.f32 %v515_v40, %v63_v32  ;;  %v859_v11 = vpop.eup %858  ;;  %v603_v47 = vmul.f32 %v857_v42, %v1210_v4  ;;  %vm608_vm0 = vweird.f32 %v857_v42  ;;  %v648_v62 = vmul.f32 %v1237_v39, %v1199_v3 }
 0x39e   :  { %v861_v50 = vpop.eup %860  ;;  %v525_v51 = vsel %vm524_vm15, %v849_v19, %v521_v43  ;;  %v618_v53 = vmul.f32 %v859_v11, %v1213_v20  ;;  %v635_v57 = vmul.f32 %v1225_v28, %v634_v7  ;;  %vm623_vm4 = vweird.f32 %v859_v11  ;;  %vm609_vm7 = vmor %vm607_vm12, %vm608_vm0 }
 0x39f   :  { %v766_v52 = vmul.f32 -1.442695, %v566_v44  ;;  %v1262_v6 = vadd.f32 1.0, %v861_v50  ;;  %v530_v55 = vsel %vm1218_vm8, %v529_v25, %v525_v51  ;;  %v604_v56 = vsub.f32 1.0, %v603_v47  ;;  %vm624_vm8 = vmor %vm622_vm13, %vm623_vm4 }
 0x3a0   :  { %v567_v60 = vmul.f32 %v530_v55, %v64_v46  ;;  %v619_v61 = vsub.f32 1.0, %v618_v53  ;;  %v636_v1 = vadd.f32 %v1225_v28, %v635_v57  ;;  %v649_v12 = vsub.f32 1.0, %v648_v62 }
 0x3a1   :  { %v1267_v59 = vpop.eup %862  ;;  %864 = vpow2.f32 %v766_v52  ;;  %v605_v0 = vmul.f32 %v857_v42, %v604_v56  ;;  %vm653_vm6 = vweird.f32 %v1237_v39  ;;  %v658_v15 = vand.u32 2147483648, %v1199_v3 }
 0x3a2   :  { %866 = vrcp.f32 %v1262_v6  ;;  %v767_v2 = vmul.f32 -1.442695, %v567_v60  ;;  %v620_v58 = vmul.f32 %v859_v11, %v619_v61  ;;  %v640_v14 = vsel %vm639_vm5, %v1225_v28, %v636_v1  ;;  %vm654_vm11 = vmor %vm652_vm3, %vm653_vm6 }
 0x3a3   :  { %v606_v13 = vadd.f32 %v857_v42, %v605_v0  ;;  %v693_v16 = vmul.f32 %v1267_v59, %v1227_v29  ;;  %v645_v63 = vsel %vm1256_vm2, %v644_v54, %v640_v14  ;;  %v650_v9 = vmul.f32 %v1237_v39, %v649_v12 }
 0x3a4   :  { %868 = vpow2.f32 %v767_v2  ;;  %v621_v8 = vadd.f32 %v859_v11, %v620_v58  ;;  %vm627_vm9 = vcmp.eq.f32.partialorder %v626_v10, 8.507059e+37  ;;  %v629_v17 = vor.u32 1.1754944e-38, %v628_v45  ;;  %724 = vst [vmem:[#allocation7 + $0x10] sm:$0xff] %v645_v63 }
 0x3a5   :  { %v610_v5 = vsel %vm609_vm7, %v857_v42, %v606_v13  ;;  %v694_v18 = vsub.f32 1.0, %v693_v16  ;;  %v651_v22 = vadd.f32 %v1237_v39, %v650_v9  ;;  %vm657_vm10 = vcmp.eq.f32.partialorder %v656_v35, 8.507059e+37 }
 0x3a6   :  { %v615_v4 = vsel %vm1252_vm1, %v614_v38, %v610_v5  ;;  %v625_v21 = vsel %vm624_vm8, %v859_v11, %v621_v8  ;;  %v659_v20 = vor.u32 1.1754944e-38, %v658_v15  ;;  %vm698_vm12 = vweird.f32 %v1267_v59 }
 0x3a7   :  { %v865_v19 = vpop.eup %864  ;;  %v630_v25 = vsel %vm627_vm9, %v629_v17, %v625_v21  ;;  %v695_v26 = vmul.f32 %v1267_v59, %v694_v18  ;;  %722 = vst [vmem:[#allocation7] sm:$0xff] %v615_v4  ;;  %v655_v27 = vsel %vm654_vm11, %v1237_v39, %v651_v22  ;;  %v703_v28 = vand.u32 2147483648, %v1227_v29 }
 0x3a8   :  { %v867_v23 = vpop.eup %866  ;;  %v598_v24 = vadd.f32 1.0, %v865_v19  ;;  %723 = vst [vmem:[#allocation7 + $0x8] sm:$0xff] %v630_v25  ;;  %v660_v31 = vsel %vm657_vm10, %v659_v20, %v655_v27  ;;  %v701_v32 = vand.u32 2147483647, %v1227_v29  ;;  %vm697_vm13 = vweird.f32 %v1227_v29 }
 0x3a9   :  { %v708_v30 = vmul.f32 %v867_v23, %v1262_v6  ;;  %v696_v3 = vadd.f32 %v1267_v59, %v695_v26  ;;  %725 = vst [vmem:[#allocation7 + $0x18] sm:$0xff] %v660_v31  ;;  %vm699_vm14 = vmor %vm697_vm13, %vm698_vm12  ;;  %v704_v37 = vor.u32 1.1754944e-38, %v703_v28  ;;  %v718_v39 = vand.u32 2147483648, %v1262_v6 }
 0x3aa   :  { %870 = vrcp.f32 %v598_v24  ;;  %v869_v33 = vpop.eup %868  ;;  %vm702_vm15 = vcmp.eq.f32.partialorder %v701_v32, 8.507059e+37  ;;  %vm713_vm0 = vweird.f32 %v867_v23  ;;  %v716_v10 = vand.u32 2147483647, %v1262_v6 }
 0x3ab   :  { %v599_v34 = vadd.f32 1.0, %v869_v33  ;;  %v709_v35 = vsub.f32 1.0, %v708_v30  ;;  %v700_v36 = vsel %vm699_vm14, %v1267_v59, %v696_v3  ;;  %vm712_vm1 = vweird.f32 %v1262_v6 }
 0x3ac   :  { %v705_v40 = vsel %vm702_vm15, %v704_v37, %v700_v36  ;;  %vm714_vm2 = vmor %vm712_vm1, %vm713_vm0  ;;  %v719_v43 = vor.u32 1.1754944e-38, %v718_v39  ;;  %vm717_vm3 = vcmp.eq.f32.partialorder %v716_v10, 8.507059e+37  ;;  %v671_v46 = vand.u32 2147483647, %v598_v24 }
 0x3ad   :  { %872 = vrcp.f32 %v599_v34  ;;  %v710_v38 = vmul.f32 %v867_v23, %v709_v35  ;;  %728 = vst [vmem:[#allocation7 + $0x30] sm:$0xff] %v705_v40  ;;  %v673_v47 = vand.u32 2147483648, %v598_v24  ;;  %vm667_vm5 = vweird.f32 %v598_v24 }
 0x3ae   :  { %vm672_vm7 = vcmp.eq.f32.partialorder %v671_v46, 8.507059e+37  ;;  %v688_v53 = vand.u32 2147483648, %v599_v34  ;;  %v686_v55 = vand.u32 2147483647, %v599_v34  ;;  %vm682_vm9 = vweird.f32 %v599_v34 }
 0x3af   :  { %v711_v29 = vadd.f32 %v867_v23, %v710_v38  ;;  %v674_v52 = vor.u32 1.1754944e-38, %v673_v47 }
 0x3b0   :  { %v871_v41 = vpop.eup %870  ;;  %v689_v59 = vor.u32 1.1754944e-38, %v688_v53  ;;  %vm687_vm11 = vcmp.eq.f32.partialorder %v686_v55, 8.507059e+37 }
 0x3b1   :  { %v663_v42 = vmul.f32 %v871_v41, %v598_v24  ;;  %v715_v45 = vsel %vm714_vm2, %v867_v23, %v711_v29  ;;  %vm668_vm4 = vweird.f32 %v871_v41 }
 0x3b2   :  { %v720_v48 = vsel %vm717_vm3, %v719_v43, %v715_v45  ;;  %vm669_vm6 = vmor %vm667_vm5, %vm668_vm4 }
 0x3b3   :  { %v664_v44 = vsub.f32 1.0, %v663_v42  ;;  %v873_v11 = vpop.eup %872  ;;  %729 = vst [vmem:[#allocation7 + $0x38] sm:$0xff] %v720_v48 }
 0x3b4   :  { %v678_v49 = vmul.f32 %v873_v11, %v599_v34  ;;  %vm683_vm8 = vweird.f32 %v873_v11 }
 0x3b5   :  { %v665_v7 = vmul.f32 %v871_v41, %v664_v44  ;;  %vm684_vm10 = vmor %vm682_vm9, %vm683_vm8 }
 0x3b6   :  { %v679_v51 = vsub.f32 1.0, %v678_v49 }
 0x3b7   :  { %v666_v50 = vadd.f32 %v871_v41, %v665_v7 }
 0x3b8   :  { %v680_v6 = vmul.f32 %v873_v11, %v679_v51 }
 0x3b9   :  { %v670_v54 = vsel %vm669_vm6, %v871_v41, %v666_v50 }
 0x3ba   :  { %v675_v56 = vsel %vm672_vm7, %v674_v52, %v670_v54  ;;  %v681_v57 = vadd.f32 %v873_v11, %v680_v6 }
 0x3bb   :  { %726 = vst [vmem:[#allocation7 + $0x20] sm:$0xff] %v675_v56 }
 0x3bc   :  { %v685_v60 = vsel %vm684_vm10, %v873_v11, %v681_v57 }
 0x3bd   :  { %v690_v61 = vsel %vm687_vm11, %v689_v59, %v685_v60 }
 0x3be   :  { %727 = vst [vmem:[#allocation7 + $0x28] sm:$0xff] %v690_v61 }
 0x3bf   :  { %742 = dma.vmem_to_hbm [thread:$0]  %s735_s5, 1024, %s737_s26, [#allocation4], %s953_s9, %s953_s9, %s954_s10  }
 0x3c0   :  { %950 = dma.done.wait [#allocation4], 1024  }
 0x3c1   :  { %951 = vsyncadd [#allocation4], 4294966272 }
 0x3c2   :  { %747 = vsyncpa [#allocation3], 1 }
 0x3c3   :  { %748 = vsyncpa [#allocation6], 1 }
 0x3c4   :  { %749 = vsyncpa [#allocation4], 1 }

</bundles_post_ra>
